<compile_context>
chip_gen: v5e
topology: v5e:2x2
jax: 0.10.0
libtpu: 0.0.40
codegen_flags: <defaults>
</compile_context>

<pallas_src>
import jax
import jax.numpy as jnp
from jax.experimental import pallas as pl
from jax.experimental.pallas import tpu as pltpu


def _gfilter_kernel(s_ref, h_ref, x_ref, o_ref):
    # s_ref: (N, N)         graph shift operator
    # h_ref: (K, Fin, Fout) filter taps (shared across the batch)
    # x_ref: (B, N, Fin)    input signals
    # o_ref: (B, N, Fout)   output, written directly in the caller's layout
    K, Fin, Fout = h_ref.shape
    B, N, _ = x_ref.shape
    BF = B * Fin

    S = s_ref[...]

    # Fold the batch into lanes: z0 columns ordered (b, p) -> wider MXU RHS
    # for the diffusion matmuls.  One cheap in-kernel lane concat instead of a
    # wrapper-side transpose + reshape.
    z0 = jnp.concatenate([x_ref[b] for b in range(B)], axis=1)   # (N, B*Fin)

    # Per-batch f32 accumulators held as values (vregs), stored once at the end.
    acc = [jnp.zeros((N, Fout), jnp.float32) for _ in range(B)]

    def contract(slab, k, col0):
        # acc_b += z_k[:, batch-b strip] @ H[k]  (shared H, no block-diag zeros)
        hk = h_ref[k]                                            # (Fin, Fout)
        for b in range(B):
            zb = slab[:, col0 + b * Fin: col0 + (b + 1) * Fin]   # (N, Fin)
            acc[b] = acc[b] + jnp.dot(zb, hk,
                                      preferred_element_type=jnp.float32)

    if K == 1:
        contract(z0, 0, 0)
    else:
        # Tap pairing: W holds [z_{2t} | z_{2t+1}]; one S^2 matmul advances
        # two taps, halving the dependent-matmul chain.
        z1 = jnp.dot(S, z0, preferred_element_type=jnp.float32)
        W = jnp.concatenate([z0, z1], axis=1)                    # (N, 2*B*Fin)
        contract(W, 0, 0)
        contract(W, 1, BF)
        n_pairs = K // 2
        if n_pairs >= 2:
            S2 = jnp.dot(S, S, preferred_element_type=jnp.float32)
            for t in range(1, n_pairs):
                W = jnp.dot(S2, W, preferred_element_type=jnp.float32)
                contract(W, 2 * t, 0)
                contract(W, 2 * t + 1, BF)
        if K % 2 == 1:
            # Right half of W is z_{K-2}; one extra step for the last odd tap.
            z_last = jnp.dot(S, W[:, BF:2 * BF],
                             preferred_element_type=jnp.float32)
            contract(z_last, K - 1, 0)

    for b in range(B):
        o_ref[b] = acc[b].astype(o_ref.dtype)


@jax.jit
def gfilter_forward(S, H, x):
    """S: (N, N), H: (K, Fin, Fout), x: (B, N, Fin) -> (B, N, Fout)."""
    N = S.shape[0]
    K, Fin, Fout = H.shape
    B = x.shape[0]
    return pl.pallas_call(
        _gfilter_kernel,
        out_shape=jax.ShapeDtypeStruct((B, N, Fout), jnp.float32),
        grid=(1,),                                 # whole problem fits in VMEM
        in_specs=[
            pl.BlockSpec((N, N), lambda i: (0, 0)),           # S
            pl.BlockSpec((K, Fin, Fout), lambda i: (0, 0, 0)),  # H (shared taps)
            pl.BlockSpec((B, N, Fin), lambda i: (0, 0, 0)),     # x
        ],
        out_specs=pl.BlockSpec((B, N, Fout), lambda i: (0, 0, 0)),
        compiler_params=pltpu.CompilerParams(
            dimension_semantics=("arbitrary",)),
    )(S.astype(jnp.float32), H.astype(jnp.float32), x.astype(jnp.float32))


def gfilter_reference(S, H, x):
    """Pure-JAX reference: sum_k einsum('ij,bjp,pq->biq', S^k, x, H[k])."""
    K = H.shape[0]
    N = S.shape[0]
    out = 0.0
    Sk = jnp.eye(N, dtype=jnp.float32)
    for k in range(K):
        out = out + jnp.einsum('ij,bjp,pq->biq', Sk, x, H[k])
        Sk = Sk @ S
    return out


if __name__ == "__main__":
    # Small deterministic setup consistent with the module:
    #   K = 8 filter taps, N = 16 graph nodes, Fin = 4, Fout = 8, batch B = 2.
    K, N, Fin, Fout, B = 8, 16, 4, 8, 2
    key = jax.random.PRNGKey(0)
    k_adj, k_H, k_x = jax.random.split(key, 3)

    # Deterministic normalized graph shift operator S = D^-1/2 L D^-1/2
    # (synthetic stand-in for the Laplacian-derived S of the original script).
    A = jax.random.uniform(k_adj, (N, N), dtype=jnp.float32)
    A = (A + A.T) * 0.5
    A = A * (1.0 - jnp.eye(N, dtype=jnp.float32))           # zero diagonal
    d = jnp.sum(A, axis=1)
    Lap = jnp.diag(d) - A                                    # L = D - A
    dinv_sqrt = jnp.diag(jnp.diag(Lap) ** (-0.5))
    S = dinv_sqrt @ Lap @ dinv_sqrt                          # Lbar

    # Parameter H ~ randn(K, Fin, Fout) (deterministic, synthetic init).
    H = jax.random.normal(k_H, (K, Fin, Fout), dtype=jnp.float32)

    # Input x: (B, N, Fin).
    x = jax.random.normal(k_x, (B, N, Fin), dtype=jnp.float32)

    out = gfilter_forward(S, H, x)
    out = jax.block_until_ready(out)

    ref = gfilter_reference(S, H, x)
    assert out.shape == (B, N, Fout)
    assert jnp.allclose(out, ref, atol=1e-3, rtol=1e-3)

    print("KERNEL_OK")
</pallas_src>

<mosaic_0001>
module attributes {stable_mosaic.version = 11 : i64} {
  func.func @_gfilter_kernel(%arg0: i32, %arg1: memref<16x16xf32, #tpu.memory_space<vmem>>, %arg2: memref<8x4x8xf32, #tpu.memory_space<vmem>>, %arg3: memref<2x16x4xf32, #tpu.memory_space<vmem>>, %arg4: memref<2x16x8xf32, #tpu.memory_space<vmem>>) attributes {dimension_semantics = [#tpu.dimension_semantics<arbitrary>], iteration_bounds = array<i64: 1>, scalar_prefetch = 0 : i64, scratch_operands = 0 : i64, tpu.core_type = #tpu.core_type<tc>, window_params = [{pipeline_mode = #tpu.pipeline_mode<synchronous>, transform_indices = @transform_0, window_bounds = array<i64: 16, 16>}, {pipeline_mode = #tpu.pipeline_mode<synchronous>, transform_indices = @transform_1, window_bounds = array<i64: 8, 4, 8>}, {pipeline_mode = #tpu.pipeline_mode<synchronous>, transform_indices = @transform_2, window_bounds = array<i64: 2, 16, 4>}, {pipeline_mode = #tpu.pipeline_mode<synchronous>, transform_indices = @transform_3, window_bounds = array<i64: 2, 16, 8>}]} {
    %c0 = arith.constant 0 : index
    %c0_0 = arith.constant 0 : index
    %0 = vector.load %arg1[%c0, %c0_0] : memref<16x16xf32, #tpu.memory_space<vmem>>, vector<16x16xf32>
    %c0_1 = arith.constant 0 : index
    %c0_2 = arith.constant 0 : index
    %c0_3 = arith.constant 0 : index
    %1 = vector.load %arg3[%c0_1, %c0_2, %c0_3] : memref<2x16x4xf32, #tpu.memory_space<vmem>>, vector<1x16x4xf32>
    %2 = vector.shape_cast %1 : vector<1x16x4xf32> to vector<16x4xf32>
    %c1 = arith.constant 1 : index
    %c0_4 = arith.constant 0 : index
    %c0_5 = arith.constant 0 : index
    %3 = vector.load %arg3[%c1, %c0_4, %c0_5] : memref<2x16x4xf32, #tpu.memory_space<vmem>>, vector<1x16x4xf32>
    %4 = vector.shape_cast %3 : vector<1x16x4xf32> to vector<16x4xf32>
    %5 = tpu.concatenate %2, %4 in 1 : vector<16x4xf32>, vector<16x4xf32> -> vector<16x8xf32>
    %cst = arith.constant 0.000000e+00 : f32
    %6 = vector.broadcast %cst : f32 to vector<16x8xf32>
    %cst_6 = arith.constant 0.000000e+00 : f32
    %7 = vector.broadcast %cst_6 : f32 to vector<16x8xf32>
    %cst_7 = arith.constant dense<0.000000e+00> : vector<16x8xf32>
    %8 = tpu.matmul %0, %5, %cst_7 {dimension_numbers = #tpu.dot_dimension_numbers<[1], [0], [0], [1], [0, 0, 1, 1], [], []>} : vector<16x16xf32>, vector<16x8xf32>, vector<16x8xf32> -> vector<16x8xf32>
    %9 = tpu.concatenate %5, %8 in 1 : vector<16x8xf32>, vector<16x8xf32> -> vector<16x16xf32>
    %c0_8 = arith.constant 0 : index
    %c0_9 = arith.constant 0 : index
    %c0_10 = arith.constant 0 : index
    %10 = vector.load %arg2[%c0_8, %c0_9, %c0_10] : memref<8x4x8xf32, #tpu.memory_space<vmem>>, vector<1x4x8xf32>
    %11 = vector.shape_cast %10 : vector<1x4x8xf32> to vector<4x8xf32>
    %12 = vector.extract_strided_slice %9 {offsets = [0, 0], sizes = [16, 4], strides = [1, 1]} : vector<16x16xf32> to vector<16x4xf32>
    %cst_11 = arith.constant dense<0.000000e+00> : vector<16x8xf32>
    %13 = tpu.matmul %12, %11, %cst_11 {dimension_numbers = #tpu.dot_dimension_numbers<[1], [0], [0], [1], [0, 0, 1, 1], [], []>} : vector<16x4xf32>, vector<4x8xf32>, vector<16x8xf32> -> vector<16x8xf32>
    %14 = arith.addf %6, %13 : vector<16x8xf32>
    %15 = vector.extract_strided_slice %9 {offsets = [0, 4], sizes = [16, 4], strides = [1, 1]} : vector<16x16xf32> to vector<16x4xf32>
    %cst_12 = arith.constant dense<0.000000e+00> : vector<16x8xf32>
    %16 = tpu.matmul %15, %11, %cst_12 {dimension_numbers = #tpu.dot_dimension_numbers<[1], [0], [0], [1], [0, 0, 1, 1], [], []>} : vector<16x4xf32>, vector<4x8xf32>, vector<16x8xf32> -> vector<16x8xf32>
    %17 = arith.addf %7, %16 : vector<16x8xf32>
    %c1_13 = arith.constant 1 : index
    %c0_14 = arith.constant 0 : index
    %c0_15 = arith.constant 0 : index
    %18 = vector.load %arg2[%c1_13, %c0_14, %c0_15] : memref<8x4x8xf32, #tpu.memory_space<vmem>>, vector<1x4x8xf32>
    %19 = vector.shape_cast %18 : vector<1x4x8xf32> to vector<4x8xf32>
    %20 = vector.extract_strided_slice %9 {offsets = [0, 8], sizes = [16, 4], strides = [1, 1]} : vector<16x16xf32> to vector<16x4xf32>
    %cst_16 = arith.constant dense<0.000000e+00> : vector<16x8xf32>
    %21 = tpu.matmul %20, %19, %cst_16 {dimension_numbers = #tpu.dot_dimension_numbers<[1], [0], [0], [1], [0, 0, 1, 1], [], []>} : vector<16x4xf32>, vector<4x8xf32>, vector<16x8xf32> -> vector<16x8xf32>
    %22 = arith.addf %14, %21 : vector<16x8xf32>
    %23 = vector.extract_strided_slice %9 {offsets = [0, 12], sizes = [16, 4], strides = [1, 1]} : vector<16x16xf32> to vector<16x4xf32>
    %cst_17 = arith.constant dense<0.000000e+00> : vector<16x8xf32>
    %24 = tpu.matmul %23, %19, %cst_17 {dimension_numbers = #tpu.dot_dimension_numbers<[1], [0], [0], [1], [0, 0, 1, 1], [], []>} : vector<16x4xf32>, vector<4x8xf32>, vector<16x8xf32> -> vector<16x8xf32>
    %25 = arith.addf %17, %24 : vector<16x8xf32>
    %cst_18 = arith.constant dense<0.000000e+00> : vector<16x16xf32>
    %26 = tpu.matmul %0, %0, %cst_18 {dimension_numbers = #tpu.dot_dimension_numbers<[1], [0], [0], [1], [0, 0, 1, 1], [], []>} : vector<16x16xf32>, vector<16x16xf32>, vector<16x16xf32> -> vector<16x16xf32>
    %cst_19 = arith.constant dense<0.000000e+00> : vector<16x16xf32>
    %27 = tpu.matmul %26, %9, %cst_19 {dimension_numbers = #tpu.dot_dimension_numbers<[1], [0], [0], [1], [0, 0, 1, 1], [], []>} : vector<16x16xf32>, vector<16x16xf32>, vector<16x16xf32> -> vector<16x16xf32>
    %c2 = arith.constant 2 : index
    %c0_20 = arith.constant 0 : index
    %c0_21 = arith.constant 0 : index
    %28 = vector.load %arg2[%c2, %c0_20, %c0_21] : memref<8x4x8xf32, #tpu.memory_space<vmem>>, vector<1x4x8xf32>
    %29 = vector.shape_cast %28 : vector<1x4x8xf32> to vector<4x8xf32>
    %30 = vector.extract_strided_slice %27 {offsets = [0, 0], sizes = [16, 4], strides = [1, 1]} : vector<16x16xf32> to vector<16x4xf32>
    %cst_22 = arith.constant dense<0.000000e+00> : vector<16x8xf32>
    %31 = tpu.matmul %30, %29, %cst_22 {dimension_numbers = #tpu.dot_dimension_numbers<[1], [0], [0], [1], [0, 0, 1, 1], [], []>} : vector<16x4xf32>, vector<4x8xf32>, vector<16x8xf32> -> vector<16x8xf32>
    %32 = arith.addf %22, %31 : vector<16x8xf32>
    %33 = vector.extract_strided_slice %27 {offsets = [0, 4], sizes = [16, 4], strides = [1, 1]} : vector<16x16xf32> to vector<16x4xf32>
    %cst_23 = arith.constant dense<0.000000e+00> : vector<16x8xf32>
    %34 = tpu.matmul %33, %29, %cst_23 {dimension_numbers = #tpu.dot_dimension_numbers<[1], [0], [0], [1], [0, 0, 1, 1], [], []>} : vector<16x4xf32>, vector<4x8xf32>, vector<16x8xf32> -> vector<16x8xf32>
    %35 = arith.addf %25, %34 : vector<16x8xf32>
    %c3 = arith.constant 3 : index
    %c0_24 = arith.constant 0 : index
    %c0_25 = arith.constant 0 : index
    %36 = vector.load %arg2[%c3, %c0_24, %c0_25] : memref<8x4x8xf32, #tpu.memory_space<vmem>>, vector<1x4x8xf32>
    %37 = vector.shape_cast %36 : vector<1x4x8xf32> to vector<4x8xf32>
    %38 = vector.extract_strided_slice %27 {offsets = [0, 8], sizes = [16, 4], strides = [1, 1]} : vector<16x16xf32> to vector<16x4xf32>
    %cst_26 = arith.constant dense<0.000000e+00> : vector<16x8xf32>
    %39 = tpu.matmul %38, %37, %cst_26 {dimension_numbers = #tpu.dot_dimension_numbers<[1], [0], [0], [1], [0, 0, 1, 1], [], []>} : vector<16x4xf32>, vector<4x8xf32>, vector<16x8xf32> -> vector<16x8xf32>
    %40 = arith.addf %32, %39 : vector<16x8xf32>
    %41 = vector.extract_strided_slice %27 {offsets = [0, 12], sizes = [16, 4], strides = [1, 1]} : vector<16x16xf32> to vector<16x4xf32>
    %cst_27 = arith.constant dense<0.000000e+00> : vector<16x8xf32>
    %42 = tpu.matmul %41, %37, %cst_27 {dimension_numbers = #tpu.dot_dimension_numbers<[1], [0], [0], [1], [0, 0, 1, 1], [], []>} : vector<16x4xf32>, vector<4x8xf32>, vector<16x8xf32> -> vector<16x8xf32>
    %43 = arith.addf %35, %42 : vector<16x8xf32>
    %cst_28 = arith.constant dense<0.000000e+00> : vector<16x16xf32>
    %44 = tpu.matmul %26, %27, %cst_28 {dimension_numbers = #tpu.dot_dimension_numbers<[1], [0], [0], [1], [0, 0, 1, 1], [], []>} : vector<16x16xf32>, vector<16x16xf32>, vector<16x16xf32> -> vector<16x16xf32>
    %c4 = arith.constant 4 : index
    %c0_29 = arith.constant 0 : index
    %c0_30 = arith.constant 0 : index
    %45 = vector.load %arg2[%c4, %c0_29, %c0_30] : memref<8x4x8xf32, #tpu.memory_space<vmem>>, vector<1x4x8xf32>
    %46 = vector.shape_cast %45 : vector<1x4x8xf32> to vector<4x8xf32>
    %47 = vector.extract_strided_slice %44 {offsets = [0, 0], sizes = [16, 4], strides = [1, 1]} : vector<16x16xf32> to vector<16x4xf32>
    %cst_31 = arith.constant dense<0.000000e+00> : vector<16x8xf32>
    %48 = tpu.matmul %47, %46, %cst_31 {dimension_numbers = #tpu.dot_dimension_numbers<[1], [0], [0], [1], [0, 0, 1, 1], [], []>} : vector<16x4xf32>, vector<4x8xf32>, vector<16x8xf32> -> vector<16x8xf32>
    %49 = arith.addf %40, %48 : vector<16x8xf32>
    %50 = vector.extract_strided_slice %44 {offsets = [0, 4], sizes = [16, 4], strides = [1, 1]} : vector<16x16xf32> to vector<16x4xf32>
    %cst_32 = arith.constant dense<0.000000e+00> : vector<16x8xf32>
    %51 = tpu.matmul %50, %46, %cst_32 {dimension_numbers = #tpu.dot_dimension_numbers<[1], [0], [0], [1], [0, 0, 1, 1], [], []>} : vector<16x4xf32>, vector<4x8xf32>, vector<16x8xf32> -> vector<16x8xf32>
    %52 = arith.addf %43, %51 : vector<16x8xf32>
    %c5 = arith.constant 5 : index
    %c0_33 = arith.constant 0 : index
    %c0_34 = arith.constant 0 : index
    %53 = vector.load %arg2[%c5, %c0_33, %c0_34] : memref<8x4x8xf32, #tpu.memory_space<vmem>>, vector<1x4x8xf32>
    %54 = vector.shape_cast %53 : vector<1x4x8xf32> to vector<4x8xf32>
    %55 = vector.extract_strided_slice %44 {offsets = [0, 8], sizes = [16, 4], strides = [1, 1]} : vector<16x16xf32> to vector<16x4xf32>
    %cst_35 = arith.constant dense<0.000000e+00> : vector<16x8xf32>
    %56 = tpu.matmul %55, %54, %cst_35 {dimension_numbers = #tpu.dot_dimension_numbers<[1], [0], [0], [1], [0, 0, 1, 1], [], []>} : vector<16x4xf32>, vector<4x8xf32>, vector<16x8xf32> -> vector<16x8xf32>
    %57 = arith.addf %49, %56 : vector<16x8xf32>
    %58 = vector.extract_strided_slice %44 {offsets = [0, 12], sizes = [16, 4], strides = [1, 1]} : vector<16x16xf32> to vector<16x4xf32>
    %cst_36 = arith.constant dense<0.000000e+00> : vector<16x8xf32>
    %59 = tpu.matmul %58, %54, %cst_36 {dimension_numbers = #tpu.dot_dimension_numbers<[1], [0], [0], [1], [0, 0, 1, 1], [], []>} : vector<16x4xf32>, vector<4x8xf32>, vector<16x8xf32> -> vector<16x8xf32>
    %60 = arith.addf %52, %59 : vector<16x8xf32>
    %cst_37 = arith.constant dense<0.000000e+00> : vector<16x16xf32>
    %61 = tpu.matmul %26, %44, %cst_37 {dimension_numbers = #tpu.dot_dimension_numbers<[1], [0], [0], [1], [0, 0, 1, 1], [], []>} : vector<16x16xf32>, vector<16x16xf32>, vector<16x16xf32> -> vector<16x16xf32>
    %c6 = arith.constant 6 : index
    %c0_38 = arith.constant 0 : index
    %c0_39 = arith.constant 0 : index
    %62 = vector.load %arg2[%c6, %c0_38, %c0_39] : memref<8x4x8xf32, #tpu.memory_space<vmem>>, vector<1x4x8xf32>
    %63 = vector.shape_cast %62 : vector<1x4x8xf32> to vector<4x8xf32>
    %64 = vector.extract_strided_slice %61 {offsets = [0, 0], sizes = [16, 4], strides = [1, 1]} : vector<16x16xf32> to vector<16x4xf32>
    %cst_40 = arith.constant dense<0.000000e+00> : vector<16x8xf32>
    %65 = tpu.matmul %64, %63, %cst_40 {dimension_numbers = #tpu.dot_dimension_numbers<[1], [0], [0], [1], [0, 0, 1, 1], [], []>} : vector<16x4xf32>, vector<4x8xf32>, vector<16x8xf32> -> vector<16x8xf32>
    %66 = arith.addf %57, %65 : vector<16x8xf32>
    %67 = vector.extract_strided_slice %61 {offsets = [0, 4], sizes = [16, 4], strides = [1, 1]} : vector<16x16xf32> to vector<16x4xf32>
    %cst_41 = arith.constant dense<0.000000e+00> : vector<16x8xf32>
    %68 = tpu.matmul %67, %63, %cst_41 {dimension_numbers = #tpu.dot_dimension_numbers<[1], [0], [0], [1], [0, 0, 1, 1], [], []>} : vector<16x4xf32>, vector<4x8xf32>, vector<16x8xf32> -> vector<16x8xf32>
    %69 = arith.addf %60, %68 : vector<16x8xf32>
    %c7 = arith.constant 7 : index
    %c0_42 = arith.constant 0 : index
    %c0_43 = arith.constant 0 : index
    %70 = vector.load %arg2[%c7, %c0_42, %c0_43] : memref<8x4x8xf32, #tpu.memory_space<vmem>>, vector<1x4x8xf32>
    %71 = vector.shape_cast %70 : vector<1x4x8xf32> to vector<4x8xf32>
    %72 = vector.extract_strided_slice %61 {offsets = [0, 8], sizes = [16, 4], strides = [1, 1]} : vector<16x16xf32> to vector<16x4xf32>
    %cst_44 = arith.constant dense<0.000000e+00> : vector<16x8xf32>
    %73 = tpu.matmul %72, %71, %cst_44 {dimension_numbers = #tpu.dot_dimension_numbers<[1], [0], [0], [1], [0, 0, 1, 1], [], []>} : vector<16x4xf32>, vector<4x8xf32>, vector<16x8xf32> -> vector<16x8xf32>
    %74 = arith.addf %66, %73 : vector<16x8xf32>
    %75 = vector.extract_strided_slice %61 {offsets = [0, 12], sizes = [16, 4], strides = [1, 1]} : vector<16x16xf32> to vector<16x4xf32>
    %cst_45 = arith.constant dense<0.000000e+00> : vector<16x8xf32>
    %76 = tpu.matmul %75, %71, %cst_45 {dimension_numbers = #tpu.dot_dimension_numbers<[1], [0], [0], [1], [0, 0, 1, 1], [], []>} : vector<16x4xf32>, vector<4x8xf32>, vector<16x8xf32> -> vector<16x8xf32>
    %77 = arith.addf %69, %76 : vector<16x8xf32>
    %c0_46 = arith.constant 0 : index
    %c0_47 = arith.constant 0 : index
    %c0_48 = arith.constant 0 : index
    %78 = vector.load %arg4[%c0_46, %c0_47, %c0_48] : memref<2x16x8xf32, #tpu.memory_space<vmem>>, vector<1x16x8xf32>
    %79 = vector.shape_cast %78 : vector<1x16x8xf32> to vector<16x8xf32>
    %80 = vector.shape_cast %74 : vector<16x8xf32> to vector<1x16x8xf32>
    tpu.vector_store %arg4[%c0_46, %c0_47, %c0_48], %80 {strides = array<i32>} : memref<2x16x8xf32, #tpu.memory_space<vmem>>, vector<1x16x8xf32>,
    %c1_49 = arith.constant 1 : index
    %c0_50 = arith.constant 0 : index
    %c0_51 = arith.constant 0 : index
    %81 = vector.load %arg4[%c1_49, %c0_50, %c0_51] : memref<2x16x8xf32, #tpu.memory_space<vmem>>, vector<1x16x8xf32>
    %82 = vector.shape_cast %81 : vector<1x16x8xf32> to vector<16x8xf32>
    %83 = vector.shape_cast %77 : vector<16x8xf32> to vector<1x16x8xf32>
    tpu.vector_store %arg4[%c1_49, %c0_50, %c0_51], %83 {strides = array<i32>} : memref<2x16x8xf32, #tpu.memory_space<vmem>>, vector<1x16x8xf32>,
    return
  }
  func.func @transform_0(%arg0: i32) -> (i32, i32) {
    %c0_i32 = arith.constant 0 : i32
    %c0_i32_0 = arith.constant 0 : i32
    %c0_i32_1 = arith.constant 0 : i32
    return %c0_i32, %c0_i32_0 : i32, i32
  }
  func.func @transform_1(%arg0: i32) -> (i32, i32, i32) {
    %c0_i32 = arith.constant 0 : i32
    %c0_i32_0 = arith.constant 0 : i32
    %c0_i32_1 = arith.constant 0 : i32
    %c0_i32_2 = arith.constant 0 : i32
    return %c0_i32, %c0_i32_0, %c0_i32_1 : i32, i32, i32
  }
  func.func @transform_2(%arg0: i32) -> (i32, i32, i32) {
    %c0_i32 = arith.constant 0 : i32
    %c0_i32_0 = arith.constant 0 : i32
    %c0_i32_1 = arith.constant 0 : i32
    %c0_i32_2 = arith.constant 0 : i32
    return %c0_i32, %c0_i32_0, %c0_i32_1 : i32, i32, i32
  }
  func.func @transform_3(%arg0: i32) -> (i32, i32, i32) {
    %c0_i32 = arith.constant 0 : i32
    %c0_i32_0 = arith.constant 0 : i32
    %c0_i32_1 = arith.constant 0 : i32
    %c0_i32_2 = arith.constant 0 : i32
    return %c0_i32, %c0_i32_0, %c0_i32_1 : i32, i32, i32
  }
}

</mosaic_0001>

<bundles_post_ra>
// kernel: gfilter_forward.1
= control target key start
LH: loop header
LB: loop body
LE: loop exit
PB: predicated region body
PF: predicated region fallthrough
CT: control target
= control target key end

     0   :  { %8 = vsyncpa [#allocation3], 0  ;;  %s852_s15 = smov [#allocation2]   ;;  %s853_s17 = smov 128   ;;  %s1030_s0 = inlined_call_operand.hbm [shape: f32[16,16], index: 0, kind: input, shape index: {}]   ;;  %s1031_s1 = inlined_call_operand.vmem [shape: f32[8,4,8], index: 1, kind: input, shape index: {}]   ;;  %s1032_s2 = inlined_call_operand.vmem [shape: f32[2,16,4], index: 2, kind: input, shape index: {}]   ;;  %s1033_s3 = inlined_call_operand.vmem [shape: f32[2,16,8], index: 3, kind: output, shape index: {}]  }
   0x1   :  { %s13_s14 = sshll.u32 %s1030_s0, 4  ;;  %s15_s16 = sshll.u32 %s852_s15, 4  ;;  %s14_s14 = int_to_ptr.hbm [resolvable:$true] %s13_s14  ;;  %s16_s16 = int_to_ptr.vmem [resolvable:$true] %s15_s16 }
   0x2   :  { %s854_s18 = smov 8  }
   0x3   :  { %21 = dma.hbm_to_vmem [thread:$0]  %s14_s14, 256, %s16_s16, [#allocation3], %s853_s17, %s853_s17, %s854_s18  }
   0x4   :  { %850 = dma.done.wait [#allocation3], 256  }
   0x5   :  { %851 = vsyncadd [#allocation3], 4294967040  ;;  %v750_v0 = vld [vmem:[%s1032_s2 + $0x18] sm:$0xff]  ;;  %s855_s21 = smov 4   ;;  %v749_v1 = vld [vmem:[%s1032_s2 + $0x10] sm:$0xff]  ;;  %vm45_vm0 = vcmask 31744  }
   0x6   :  { %41 = vrot.lane.b32.xlu0 %v750_v0, %s855_s21  ;;  %v33_v2 = vld [vmem:[%s1032_s2 + $0x8] sm:$0xff]  ;;  %v32_v5 = vld [vmem:[%s1032_s2] sm:$0xff]  ;;  %vm48_vm1 = vcmask 130048   ;;  %vm86_vm2 = vcmask 64512   ;;  %vm102_vm3 = vcmask 1043456   ;;  %s856_s2 = smov 116  }
   0x7   :  { %v30_v7 = vld [vmem:[#allocation2] sm:$0xff]  ;;  %v31_v9 = vld [vmem:[#allocation2 + $0x8] sm:$0xff]  ;;  %s857_s29 = smov 124   ;;  %s858_s30 = smov 120   ;;  %v786_v40 = vld [vmem:[%s1031_s1 + $0x10] sm:$0xf] }
   0x8   :  { %v753_v13 = vld [vmem:[%s1031_s1 + $0x4] sm:$0xf]  ;;  %v89_v18 = vld [vmem:[%s1031_s1] sm:$0xf]  ;;  %v770_v25 = vld [vmem:[%s1031_s1 + $0x8] sm:$0xf] }
   0x9   :  { %760 = vmatpush.msk.msra.mxu3 %vm102_vm3, %v753_v13  ;;  %818 = vmatpush.msk.msra.mxu2 %vm102_vm3, %v753_v13  ;;  %v777_v39 = vld [vmem:[%s1031_s1 + $0xc] sm:$0xf]  ;;  %v793_v51 = vld [vmem:[%s1031_s1 + $0x14] sm:$0xf]  ;;  %v802_v59 = vld [vmem:[%s1031_s1 + $0x18] sm:$0xf] }
   0xa   :  { %754 = vmatpush.msk.msra.mxu1 %vm102_vm3, %v753_v13 }
   0xb   :  { %757 = vmatpush.msk.msrb.mxu2 %vm102_vm3, %v89_v18 }
   0xc   :  { %763 = vmatpush.msk.msrb.mxu1 %vm102_vm3, %v89_v18 }
   0xe   :  { %39 = vrot.lane.b32.xlu0 %v749_v1, %s855_s21 }
  0x78   :  { %v42_v3 = vpop.permute.xlu0 %41 }
  0x79   :  { %v47_v4 = vsel %vm45_vm0, %v33_v2, %v42_v3 }
  0x7a   :  { %69 = vmatpush.msra.mxu0 %v47_v4 }
  0x80   :  { %v40_v6 = vpop.permute.xlu0 %39 }
  0x81   :  { %v46_v8 = vsel %vm45_vm0, %v32_v5, %v40_v6 }
  0x82   :  { %70 = vmatpush.msra.mxu0 %v46_v8 }
  0x83   :  { %751 = vmatmul.msk.f32.vlgmr.msra.gmra.mxu0 %vm48_vm1, %v30_v7 }
  0x84   :  { %771 = vmatpush.msk.msrb.mxu0 %vm102_vm3, %v770_v25 }
  0x8b   :  { %752 = vmatmul.msk.f32.gmra.mxu0 %vm48_vm1, %v31_v9 }
 0x100   :  { %v72_v10 = vpop.f32.mrf.mxu0 }
 0x101   :  { %80 = vrot.lane.b32.xlu2 %v72_v10, %s854_s18 }
 0x108   :  { %v75_v11 = vpop.f32.mrf.mxu0 }
 0x109   :  { %82 = vrot.lane.b32.xlu1 %v75_v11, %s854_s18  ;;  %v809_v11 = vld [vmem:[%s1031_s1 + $0x1c] sm:$0xf] }
 0x15b   :  { %v81_v12 = vpop.permute.xlu2 %80 }
 0x15c   :  { %v87_v14 = vsel %vm86_vm2, %v46_v8, %v81_v12 }
 0x15d   :  { %159 = vrot.lane.b32.xlu2 %v87_v14, %s856_s2 }
 0x165   :  { %190 = vrot.lane.b32.xlu2 %v87_v14, %s857_s29 }
 0x17b   :  { %v83_v15 = vpop.permute.xlu1 %82 }
 0x17c   :  { %v88_v16 = vsel %vm86_vm2, %v47_v4, %v83_v15 }
 0x17d   :  { %161 = vrot.lane.b32.xlu0 %v88_v16, %s856_s2  ;;  %96 = vrot.lane.b32.xlu1 %v88_v16, %s858_s30 }
 0x17e   :  { %264 = vmatpush.msrb.mxu3 %v88_v16 }
 0x180   :  { %265 = vmatpush.msrb.mxu3 %v87_v14 }
 0x185   :  { %192 = vrot.lane.b32.xlu0 %v88_v16, %s857_s29  ;;  %94 = vrot.lane.b32.xlu1 %v87_v14, %s858_s30 }
 0x1b7   :  { %v160_v17 = vpop.permute.xlu2 %159 }
 0x1b8   :  { %761 = vmatmul.msk.f32.vlgmr.msra.gmra.mxu3 %vm45_vm0, %v160_v17 }
 0x1b9   :  { %781 = vmatpush.msk.msra.mxu3 %vm102_vm3, %v777_v39 }
 0x1bf   :  { %v191_v22 = vpop.permute.xlu2 %190 }
 0x1ef   :  { %v162_v19 = vpop.permute.xlu0 %161  ;;  %v97_v20 = vpop.permute.xlu1 %96 }
 0x1f0   :  { %756 = vmatmul.msk.f32.vlgmr.msra.gmra.mxu2 %vm45_vm0, %v97_v20  ;;  %762 = vmatmul.msk.f32.gmra.mxu3 %vm45_vm0, %v162_v19 }
 0x1f1   :  { %235 = vmatpush.msra.mxu2 %v31_v9 }
 0x1f3   :  { %236 = vmatpush.msra.mxu2 %v30_v7 }
 0x1f7   :  { %v95_v21 = vpop.permute.xlu1 %94  ;;  %v193_v23 = vpop.permute.xlu0 %192 }
 0x1f8   :  { %755 = vmatmul.msk.f32.vlgmr.msra.gmra.mxu1 %vm45_vm0, %v95_v21  ;;  %758 = vmatmul.msk.f32.vlgmr.msrb.gmra.mxu2 %vm45_vm0, %v87_v14 }
 0x1f9   :  { %774 = vmatpush.msk.msra.mxu1 %vm102_vm3, %v770_v25  ;;  %778 = vmatpush.msk.msrb.mxu2 %vm102_vm3, %v777_v39 }
 0x200   :  { %759 = vmatmul.msk.f32.gmra.mxu2 %vm45_vm0, %v88_v16  ;;  %764 = vmatmul.msk.f32.vlgmr.msrb.gmra.mxu1 %vm45_vm0, %v191_v22 }
 0x201   :  { %787 = vmatpush.msk.msrb.mxu1 %vm102_vm3, %v786_v40 }
 0x208   :  { %765 = vmatmul.msk.f32.gmra.mxu1 %vm45_vm0, %v193_v23  ;;  %766 = vmatmul.msk.f32.vlgmr.msra.gmra.mxu2 %vm48_vm1, %v30_v7 }
 0x209   :  { %790 = vmatpush.msk.msra.mxu2 %vm102_vm3, %v786_v40 }
 0x210   :  { %767 = vmatmul.msk.f32.gmra.mxu2 %vm48_vm1, %v31_v9 }
 0x23b   :  { %v184_v29 = vpop.f32.mrf.mxu3 }
 0x273   :  { %v126_v24 = vpop.f32.mrf.mxu2  ;;  %v936_v36 = vpop.f32.mrf.mxu3 }
 0x275   :  { %v123_v26 = vpop.f32.mrf.mxu1 }
 0x27b   :  { %v153_v27 = vpop.f32.mrf.mxu2 }
 0x27c   :  { %v154_v28 = vadd.f32 %v153_v27, %v123_v26 }
 0x27d   :  { %v215_v30 = vpop.f32.mrf.mxu1 }
 0x27e   :  { %v932_v31 = vadd.f32 %v215_v30, %v184_v29 }
 0x283   :  { %v156_v32 = vpop.f32.mrf.mxu2 }
 0x284   :  { %v157_v33 = vadd.f32 %v156_v32, %v126_v24 }
 0x285   :  { %v979_v54 = vpop.f32.mrf.mxu1 }
 0x28b   :  { %v238_v34 = vpop.f32.mrf.mxu2 }
 0x28c   :  { %768 = vmatmul.msk.f32.vlgmr.msrb.gmra.mxu3 %vm48_vm1, %v238_v34 }
 0x28d   :  { %794 = vmatpush.msk.msrb.mxu3 %vm102_vm3, %v793_v51 }
 0x293   :  { %v241_v35 = vpop.f32.mrf.mxu2 }
 0x294   :  { %769 = vmatmul.msk.f32.gmra.mxu3 %vm48_vm1, %v241_v35 }
 0x30f   :  { %v267_v37 = vpop.f32.mrf.mxu3 }
 0x310   :  { %344 = vrot.lane.b32.xlu0 %v267_v37, %s858_s30  ;;  %309 = vrot.lane.b32.xlu1 %v267_v37, %s857_s29 }
 0x311   :  { %772 = vmatmul.msk.f32.vlgmr.msrb.gmra.mxu0 %vm45_vm0, %v267_v37 }
 0x317   :  { %v270_v38 = vpop.f32.mrf.mxu3 }
 0x318   :  { %380 = vrot.lane.b32.xlu1 %v267_v37, %s856_s2  ;;  %382 = vrot.lane.b32.xlu0 %v270_v38, %s856_s2 }
 0x319   :  { %311 = vrot.lane.b32.xlu2 %v270_v38, %s857_s29  ;;  %773 = vmatmul.msk.f32.gmra.mxu0 %vm45_vm0, %v270_v38 }
 0x31a   :  { %427 = vmatpush.msra.mxu0 %v270_v38 }
 0x31c   :  { %428 = vmatpush.msra.mxu0 %v267_v37 }
 0x31e   :  { %797 = vmatpush.msk.msrb.mxu0 %vm102_vm3, %v793_v51 }
 0x321   :  { %346 = vrot.lane.b32.xlu2 %v270_v38, %s858_s30  ;;  %784 = vmatmul.msk.f32.vlgmr.msra.gmra.mxu0 %vm48_vm1, %v238_v34 }
 0x322   :  { %810 = vmatpush.msk.msra.mxu0 %vm102_vm3, %v809_v11 }
 0x329   :  { %785 = vmatmul.msk.f32.gmra.mxu0 %vm48_vm1, %v241_v35 }
 0x373   :  { %v312_v41 = vpop.permute.xlu2 %311 }
 0x37b   :  { %v347_v44 = vpop.permute.xlu2 %346 }
 0x382   :  { %v345_v42 = vpop.permute.xlu0 %344  ;;  %v310_v43 = vpop.permute.xlu1 %309 }
 0x383   :  { %775 = vmatmul.msk.f32.vlgmr.msra.gmra.mxu1 %vm45_vm0, %v310_v43  ;;  %779 = vmatmul.msk.f32.vlgmr.msrb.gmra.mxu2 %vm45_vm0, %v345_v42 }
 0x384   :  { %803 = vmatpush.msk.msrb.mxu2 %vm102_vm3, %v802_v59 }
 0x38a   :  { %v381_v45 = vpop.permute.xlu1 %380  ;;  %v383_v48 = vpop.permute.xlu0 %382 }
 0x38b   :  { %776 = vmatmul.msk.f32.gmra.mxu1 %vm45_vm0, %v312_v41  ;;  %780 = vmatmul.msk.f32.gmra.mxu2 %vm45_vm0, %v347_v44 }
 0x38c   :  { %782 = vmatmul.msk.f32.vlgmr.msra.gmra.mxu3 %vm45_vm0, %v381_v45 }
 0x38d   :  { %806 = vmatpush.msk.msra.mxu3 %vm102_vm3, %v802_v59 }
 0x38e   :  { %v301_v46 = vpop.f32.mrf.mxu0 }
 0x38f   :  { %v307_v47 = vadd.f32 %v301_v46, %v154_v28 }
 0x394   :  { %783 = vmatmul.msk.f32.gmra.mxu3 %vm45_vm0, %v383_v48 }
 0x396   :  { %v304_v49 = vpop.f32.mrf.mxu0 }
 0x397   :  { %v308_v50 = vadd.f32 %v304_v49, %v157_v33  ;;  %v219_v33 = vadd.f32 %v979_v54, %v936_v36 }
 0x39e   :  { %v430_v52 = vpop.f32.mrf.mxu0 }
 0x39f   :  { %507 = vrot.lane.b32.xlu2 %v430_v52, %s858_s30  ;;  %472 = vrot.lane.b32.xlu1 %v430_v52, %s857_s29 }
 0x3a0   :  { %788 = vmatmul.msk.f32.vlgmr.msrb.gmra.mxu1 %vm45_vm0, %v430_v52 }
 0x3a6   :  { %v433_v53 = vpop.f32.mrf.mxu0 }
 0x3a7   :  { %543 = vrot.lane.b32.xlu2 %v430_v52, %s856_s2  ;;  %509 = vrot.lane.b32.xlu1 %v433_v53, %s858_s30 }
 0x3a8   :  { %474 = vrot.lane.b32.xlu0 %v433_v53, %s857_s29  ;;  %789 = vmatmul.msk.f32.gmra.mxu1 %vm45_vm0, %v433_v53 }
 0x3a9   :  { %590 = vmatpush.msra.mxu1 %v433_v53 }
 0x3ab   :  { %591 = vmatpush.msra.mxu1 %v430_v52 }
 0x3ad   :  { %813 = vmatpush.msk.msrb.mxu1 %vm102_vm3, %v809_v11 }
 0x3b0   :  { %545 = vrot.lane.b32.xlu0 %v433_v53, %s856_s2  ;;  %800 = vmatmul.msk.f32.vlgmr.msra.gmra.mxu1 %vm48_vm1, %v238_v34 }
 0x3b8   :  { %801 = vmatmul.msk.f32.gmra.mxu1 %vm48_vm1, %v241_v35 }
 0x3f9   :  { %v508_v55 = vpop.permute.xlu2 %507 }
 0x3fa   :  { %795 = vmatmul.msk.f32.vlgmr.msrb.gmra.mxu3 %vm45_vm0, %v508_v55 }
 0x400   :  { %v334_v56 = vpop.f32.mrf.mxu1 }
 0x401   :  { %v340_v57 = vadd.f32 %v334_v56, %v932_v31  ;;  %v544_v58 = vpop.permute.xlu2 %543 }
 0x402   :  { %798 = vmatmul.msk.f32.vlgmr.msrb.gmra.mxu0 %vm45_vm0, %v544_v58 }
 0x406   :  { %v372_v62 = vpop.f32.mrf.mxu2 }
 0x407   :  { %v378_v1 = vadd.f32 %v372_v62, %v307_v47 }
 0x408   :  { %v337_v61 = vpop.f32.mrf.mxu1 }
 0x409   :  { %v341_v37 = vadd.f32 %v337_v61, %v219_v33 }
 0x40e   :  { %v375_v4 = vpop.f32.mrf.mxu2 }
 0x40f   :  { %v379_v6 = vadd.f32 %v375_v4, %v308_v50  ;;  %v405_v18 = vpop.f32.mrf.mxu3 }
 0x410   :  { %v411_v29 = vadd.f32 %v405_v18, %v340_v57 }
 0x411   :  { %v473_v60 = vpop.permute.xlu1 %472 }
 0x412   :  { %791 = vmatmul.msk.f32.vlgmr.msra.gmra.mxu2 %vm45_vm0, %v473_v60 }
 0x417   :  { %v408_v20 = vpop.f32.mrf.mxu3 }
 0x418   :  { %v412_v41 = vadd.f32 %v408_v20, %v341_v37 }
 0x419   :  { %v510_v63 = vpop.permute.xlu1 %509 }
 0x41a   :  { %v475_v0 = vpop.permute.xlu0 %474  ;;  %796 = vmatmul.msk.f32.gmra.mxu3 %vm45_vm0, %v510_v63 }
 0x41b   :  { %792 = vmatmul.msk.f32.gmra.mxu2 %vm45_vm0, %v475_v0 }
 0x41d   :  { %v464_v2 = vpop.f32.mrf.mxu1 }
 0x41e   :  { %v470_v3 = vadd.f32 %v464_v2, %v378_v1 }
 0x422   :  { %v546_v5 = vpop.permute.xlu0 %545 }
 0x423   :  { %799 = vmatmul.msk.f32.gmra.mxu0 %vm45_vm0, %v546_v5 }
 0x425   :  { %v467_v7 = vpop.f32.mrf.mxu1 }
 0x426   :  { %v471_v8 = vadd.f32 %v467_v7, %v379_v6 }
 0x42d   :  { %v593_v9 = vpop.f32.mrf.mxu1 }
 0x42e   :  { %670 = vrot.lane.b32.xlu0 %v593_v9, %s858_s30  ;;  %635 = vrot.lane.b32.xlu1 %v593_v9, %s857_s29 }
 0x42f   :  { %804 = vmatmul.msk.f32.vlgmr.msrb.gmra.mxu2 %vm45_vm0, %v593_v9 }
 0x435   :  { %v596_v10 = vpop.f32.mrf.mxu1 }
 0x436   :  { %706 = vrot.lane.b32.xlu1 %v593_v9, %s856_s2  ;;  %708 = vrot.lane.b32.xlu0 %v596_v10, %s856_s2 }
 0x437   :  { %637 = vrot.lane.b32.xlu2 %v596_v10, %s857_s29  ;;  %805 = vmatmul.msk.f32.gmra.mxu2 %vm45_vm0, %v596_v10 }
 0x43f   :  { %672 = vrot.lane.b32.xlu2 %v596_v10, %s858_s30 }
 0x47d   :  { %v535_v23 = vpop.f32.mrf.mxu3 }
 0x47e   :  { %v541_v26 = vadd.f32 %v535_v23, %v470_v3 }
 0x47f   :  { %v568_v21 = vpop.f32.mrf.mxu0 }
 0x491   :  { %v638_v12 = vpop.permute.xlu2 %637 }
 0x495   :  { %v497_v19 = vpop.f32.mrf.mxu2 }
 0x496   :  { %v503_v32 = vadd.f32 %v497_v19, %v411_v29 }
 0x498   :  { %v574_v38 = vadd.f32 %v568_v21, %v503_v32 }
 0x499   :  { %v673_v15 = vpop.permute.xlu2 %672 }
 0x49d   :  { %v538_v27 = vpop.f32.mrf.mxu3 }
 0x49e   :  { %v500_v22 = vpop.f32.mrf.mxu2  ;;  %v542_v35 = vadd.f32 %v538_v27, %v471_v8 }
 0x49f   :  { %v504_v46 = vadd.f32 %v500_v22, %v412_v41 }
 0x4a0   :  { %v671_v13 = vpop.permute.xlu0 %670  ;;  %v636_v14 = vpop.permute.xlu1 %635 }
 0x4a1   :  { %811 = vmatmul.msk.f32.vlgmr.msra.gmra.mxu0 %vm45_vm0, %v671_v13  ;;  %807 = vmatmul.msk.f32.vlgmr.msra.gmra.mxu3 %vm45_vm0, %v636_v14  ;;  %v571_v24 = vpop.f32.mrf.mxu0 }
 0x4a2   :  { %v575_v36 = vadd.f32 %v571_v24, %v504_v46 }
 0x4a8   :  { %v707_v16 = vpop.permute.xlu1 %706  ;;  %v709_v17 = vpop.permute.xlu0 %708 }
 0x4a9   :  { %812 = vmatmul.msk.f32.gmra.mxu0 %vm45_vm0, %v673_v15  ;;  %808 = vmatmul.msk.f32.gmra.mxu3 %vm45_vm0, %v638_v12 }
 0x4aa   :  { %814 = vmatmul.msk.f32.vlgmr.msrb.gmra.mxu1 %vm45_vm0, %v707_v16 }
 0x4b2   :  { %815 = vmatmul.msk.f32.gmra.mxu1 %vm45_vm0, %v709_v17  ;;  %v627_v25 = vpop.f32.mrf.mxu2 }
 0x4b3   :  { %v633_v28 = vadd.f32 %v627_v25, %v541_v26 }
 0x4ba   :  { %v630_v34 = vpop.f32.mrf.mxu2 }
 0x4bb   :  { %v634_v39 = vadd.f32 %v630_v34, %v542_v35 }
 0x51e   :  { %v698_v30 = vpop.f32.mrf.mxu0 }
 0x51f   :  { %v704_v31 = vadd.f32 %v698_v30, %v633_v28 }
 0x521   :  { %739 = vst.msk [vmem:[%s1033_s3] sm:$0xff] %vm86_vm2, %v704_v31 }
 0x524   :  { %v660_v40 = vpop.f32.mrf.mxu3 }
 0x525   :  { %v666_v42 = vadd.f32 %v660_v40, %v574_v38 }
 0x526   :  { %v701_v43 = vpop.f32.mrf.mxu0 }
 0x527   :  { %v705_v44 = vadd.f32 %v701_v43, %v634_v39  ;;  %v731_v45 = vpop.f32.mrf.mxu1 }
 0x528   :  { %v737_v47 = vadd.f32 %v731_v45, %v666_v42 }
 0x529   :  { %740 = vst.msk [vmem:[%s1033_s3 + $0x8] sm:$0xff] %vm86_vm2, %v705_v44 }
 0x52a   :  { %816 = vst.msk [vmem:[%s1033_s3 + $0x10] sm:$0xff] %vm86_vm2, %v737_v47 }
 0x52c   :  { %v663_v48 = vpop.f32.mrf.mxu3 }
 0x52d   :  { %v667_v49 = vadd.f32 %v663_v48, %v575_v36 }
 0x52f   :  { %v734_v50 = vpop.f32.mrf.mxu1 }
 0x530   :  { %v738_v51 = vadd.f32 %v734_v50, %v667_v49 }
 0x532   :  { %817 = vst.msk [vmem:[%s1033_s3 + $0x18] sm:$0xff] %vm86_vm2, %v738_v51 }
 0x533   :  { %748 = vsyncpa [#allocation3], 1 }

</bundles_post_ra>
